<compile_context>
chip_gen: v7x
topology: tpu7x:2x2x1
jax: 0.10.0
libtpu: 0.0.40
codegen_flags: <defaults>
</compile_context>

<pallas_src>
import math

import numpy as np
import jax
import jax.numpy as jnp
from jax.experimental import pallas as pl
from jax.experimental.pallas import tpu as pltpu


_TARGET_BLOCK_BYTES = 8 * 1024 * 1024       # ~8 MiB output tiles
_PALLAS_MIN_BYTES = 1 << 20                 # below this, plain jnp.broadcast_to wins
_MAX_PATTERN_ELEMS = 4096                   # cap on lane-dense row width when widening
_SPLIT_FOR_MEGACORE_BYTES = 4 << 20         # force >= 2 grid steps above this size


def _broadcast_rows_kernel(pattern_ref, out_ref):
    # pattern_ref: (1, cw) lane-dense constant pattern (constant index_map -> VMEM resident)
    # out_ref:     (tb, cw) output tile -> sublane broadcast + full-width stores
    out_ref[...] = jnp.broadcast_to(pattern_ref[...], out_ref.shape)


def _round_up(v: int, m: int) -> int:
    return -(-v // m) * m


def _pallas_tiled_fill(pattern_row: jax.Array, n_rows: int, W: int, tb: int, cw: int) -> jax.Array:
    """Fill an (n_rows, W) array where every row equals the periodic pattern."""
    dtype = pattern_row.dtype
    itemsize = dtype.itemsize
    grid = (pl.cdiv(n_rows, tb), pl.cdiv(W, cw))
    return pl.pallas_call(
        _broadcast_rows_kernel,
        out_shape=jax.ShapeDtypeStruct((n_rows, W), dtype),
        grid_spec=pltpu.PrefetchScalarGridSpec(
            num_scalar_prefetch=0,
            grid=grid,
            # Constant row index -> pattern slab stays resident in VMEM.
            in_specs=[pl.BlockSpec((1, cw), lambda i, j: (0, j))],
            out_specs=pl.BlockSpec((tb, cw), lambda i, j: (i, j)),
        ),
        compiler_params=pltpu.CompilerParams(
            dimension_semantics=("parallel", "parallel"),
            vmem_limit_bytes=32 * 1024 * 1024,
        ),
        cost_estimate=pl.CostEstimate(
            flops=0,
            transcendentals=0,
            bytes_accessed=n_rows * W * itemsize + W * itemsize,
        ),
    )(pattern_row)


def constant_forward(x: jax.Array, constant: jax.Array, input_dim: int = 1) -> jax.Array:
    """JAX/Pallas equivalent of Constant.forward."""
    constant = jnp.asarray(constant)

    # input.dim() == self.dim -> return the constant itself (no kernel).
    if x.ndim == input_dim:
        return constant

    batch_shape = x.shape[: x.ndim - input_dim] if input_dim > 0 else x.shape
    num_rows = int(np.prod(batch_shape)) if len(batch_shape) > 0 else 1

    # Mirrors torch `expand(*shape)` / `expand(*shape, -1)`; multi-dim constants
    # keep their full shape appended.
    final_shape = tuple(batch_shape) if constant.ndim == 0 else tuple(batch_shape) + tuple(constant.shape)

    const_flat = constant.reshape(-1)
    C = int(const_flat.shape[0])
    itemsize = const_flat.dtype.itemsize
    T = num_rows * C
    total_bytes = T * itemsize

    # Tiny / degenerate outputs: Pallas launch overhead dwarfs the fill.
    if total_bytes < _PALLAS_MIN_BYTES or C == 0 or num_rows == 0:
        return jnp.broadcast_to(constant, final_shape)

    # ---- choose lane-dense row width W = k*C with k | num_rows  (exact: no
    #      padded rows -> no post-kernel tail slice) -------------------------
    sub = max(8, 32 // itemsize)            # dtype-aware sublane multiple (8/16/32)
    m = 128 // math.gcd(C, 128)             # minimal repeat making W a multiple of 128
    if num_rows % m == 0:
        k = m
        while num_rows % (k * 2) == 0 and (k * 2) * C <= _MAX_PATTERN_ELEMS:
            k *= 2
    else:
        # No exactly-lane-dense factoring; take the widest divisor of num_rows
        # (wide rows keep the masked lane tail negligible).
        k = 1
        max_k = min(num_rows, max(1, _MAX_PATTERN_ELEMS // C))
        for cand in range(max_k, 1, -1):
            if num_rows % cand == 0:
                k = cand
                break
    W = k * C
    n_rows = num_rows // k                  # exact: n_rows * W == T

    # ---- tile sizes (~_TARGET_BLOCK_BYTES per output tile) -----------------
    row_bytes = W * itemsize
    if row_bytes * sub <= _TARGET_BLOCK_BYTES:
        cw = W                               # full-width rows (full extent allowed)
    else:
        # Very wide constant: also tile the lane axis (multiple of 128) so a
        # single block never blows VMEM on v7x.
        cw = (_TARGET_BLOCK_BYTES // (sub * itemsize)) // 128 * 128
        cw = max(cw, 128)

    tb = (_TARGET_BLOCK_BYTES // (cw * itemsize)) // sub * sub
    tb = max(tb, sub)
    tb = min(tb, _round_up(n_rows, sub))

    # Ensure >= 2 grid steps for big fills so v7x's 2 TensorCores both work.
    n_col_blocks = -(-W // cw)
    n_row_blocks = -(-n_rows // tb)
    if (total_bytes > _SPLIT_FOR_MEGACORE_BYTES
            and n_row_blocks * n_col_blocks < 2 and n_rows > sub):
        tb = min(tb, _round_up(-(-n_rows // 2), sub))

    pattern = (jnp.tile(const_flat, k) if k > 1 else const_flat).reshape(1, W)

    out2d = _pallas_tiled_fill(pattern, n_rows, W, tb, cw)
    return out2d.reshape(final_shape)        # n_rows*W == T -> no slice, no copy


if __name__ == "__main__":
    key = jax.random.PRNGKey(0)

    # Deterministic "parameter": constant vector of shape (5,), as __init__ stores it.
    constant = jnp.arange(5, dtype=jnp.float32) * 0.5 + 1.0  # [1.0, 1.5, 2.0, 2.5, 3.0]
    input_dim = 1

    # Small example input (bypass path): batch dims (2, 4), feature dim 16.
    x = jax.random.normal(key, (2, 4, 16), dtype=jnp.float32)
    out = jax.block_until_ready(constant_forward(x, constant, input_dim=input_dim))
    assert out.shape == (2, 4, 5), out.shape
    assert jnp.allclose(out, jnp.broadcast_to(constant, (2, 4, 5))), "mismatch (vector constant)"

    # Scalar-constant path (output has no trailing constant axis).
    scalar_const = jnp.float32(7.25)
    out_s = jax.block_until_ready(constant_forward(x, scalar_const, input_dim=input_dim))
    assert out_s.shape == (2, 4), out_s.shape
    assert jnp.allclose(out_s, jnp.full((2, 4), 7.25, dtype=jnp.float32)), "mismatch (scalar)"

    # input.dim() == input_dim path (returns the constant itself, no kernel).
    x1d = jax.random.normal(key, (16,), dtype=jnp.float32)
    out_same = jax.block_until_ready(constant_forward(x1d, constant, input_dim=input_dim))
    assert out_same.shape == (5,)
    assert jnp.allclose(out_same, constant)

    # Pallas path, lane-dense divisible case: num_rows = 512*128 (multiple of 128).
    x_big = jax.random.normal(key, (512, 128, 16), dtype=jnp.float32)
    out_big = jax.block_until_ready(constant_forward(x_big, constant, input_dim=input_dim))
    assert out_big.shape == (512, 128, 5), out_big.shape
    assert jnp.allclose(out_big, jnp.broadcast_to(constant, (512, 128, 5))), "mismatch (divisible)"

    # Pallas path, batch not divisible by 128 (exercises divisor fallback, no tail slice).
    x_odd = jax.random.normal(key, (750, 100, 16), dtype=jnp.float32)
    out_odd = jax.block_until_ready(constant_forward(x_odd, constant, input_dim=input_dim))
    assert out_odd.shape == (750, 100, 5), out_odd.shape
    assert jnp.allclose(out_odd, jnp.broadcast_to(constant, (750, 100, 5))), "mismatch (fallback)"

    print("KERNEL_OK")
</pallas_src>

<mosaic_0001>
module attributes {stable_mosaic.version = 11 : i64} {
  func.func @_broadcast_rows_kernel(%arg0: i32, %arg1: i32, %arg2: memref<1x2560xf32, #tpu.memory_space<vmem>>, %arg3: memref<128x2560xf32, #tpu.memory_space<vmem>>) attributes {dimension_semantics = [#tpu.dimension_semantics<parallel>, #tpu.dimension_semantics<parallel>], iteration_bounds = array<i64: 1, 1>, scalar_prefetch = 0 : i64, scratch_operands = 0 : i64, tpu.core_type = #tpu.core_type<tc>, window_params = [{transform_indices = @transform_0, window_bounds = array<i64: 1, 2560>}, {transform_indices = @transform_1, window_bounds = array<i64: 128, 2560>}]} {
    %c0 = arith.constant 0 : index
    %c0_0 = arith.constant 0 : index
    %0 = vector.load %arg2[%c0, %c0_0] : memref<1x2560xf32, #tpu.memory_space<vmem>>, vector<1x2560xf32>
    %1 = vector.shape_cast %0 : vector<1x2560xf32> to vector<1x2560xf32>
    %2 = vector.broadcast %1 : vector<1x2560xf32> to vector<128x2560xf32>
    %c0_1 = arith.constant 0 : index
    %c0_2 = arith.constant 0 : index
    %3 = vector.load %arg3[%c0_1, %c0_2] : memref<128x2560xf32, #tpu.memory_space<vmem>>, vector<128x2560xf32>
    tpu.vector_store %arg3[%c0_1, %c0_2], %2 {strides = array<i32>} : memref<128x2560xf32, #tpu.memory_space<vmem>>, vector<128x2560xf32>,
    return
  }
  func.func @transform_0(%arg0: i32, %arg1: i32) -> (i32, i32) {
    %c0_i32 = arith.constant 0 : i32
    %c0_i32_0 = arith.constant 0 : i32
    return %c0_i32, %arg1 : i32, i32
  }
  func.func @transform_1(%arg0: i32, %arg1: i32) -> (i32, i32) {
    %c0_i32 = arith.constant 0 : i32
    return %arg0, %arg1 : i32, i32
  }
}

</mosaic_0001>

<bundles_post_ra>
// kernel: tpu_custom_call.1
= control target key start
LH: loop header
LB: loop body
LE: loop exit
PB: predicated region body
PF: predicated region fallthrough
CT: control target
= control target key end

     0   :  { %6 = vsyncpa [#allocation3], 0  ;;  %s932_s0 = inlined_call_operand.hbm [shape: f32[1,2560], index: 0, kind: input, shape index: {}]   ;;  %s933_s1 = inlined_call_operand.hbm [shape: f32[128,2560], index: 1, kind: output, shape index: {}]  }
   0x1   :  { %7 = vsyncpa [#allocation4], 0  ;;  %s516_s6 = smov [#allocation2]   ;;  %s468_s10 = scalar_lea.hbm %s932_s0, 320 }
   0x2   :  { %s14_s7 = sshll.u32 %s516_s6, 4  ;;  %p469_p0 = scmp.ne.s32.totalorder %s932_s0, %s468_s10  ;;  %s15_s7 = int_to_ptr.vmem [resolvable:$true] %s14_s7 }
   0x3   :  { %p472_p1 = scmp.lt.u32.totalorder %s468_s10, %s932_s0 }
   0x5   :  { %p474_p2 = pnand %p472_p1, %p469_p0 }
   0x7   :  { %477 = shalt.err (!%p474_p2)
}
   0x8   :  { %s478_s15 = scalar_lea.vmem %s15_s7, 320  ;;  %p483_p4 = scmp.lt.s32.totalorder %s15_s7, %s15_s7 }
   0x9   :  { %p479_p3 = scmp.ne.s32.totalorder %s15_s7, %s478_s15  ;;  %p484_p5 = scmp.lt.s32.totalorder %s478_s15, %s478_s15 }
   0xb   :  { %p485_p6 = por %p484_p5, %p483_p4 }
   0xd   :  { %p486_p7 = pnand %p485_p6, %p479_p3 }
   0xf   :  { %489 = shalt.err (!%p486_p7)
}
  0x10   :  { %17 = dma.hbm_to_vmem [thread:$0]  %s932_s0, 320, %s15_s7, [#allocation3]  }
  0x11   :  { %512 = dma.done.wait [#allocation3], 320  }
  0x12   :  { %513 = vsyncadd [#allocation3], 4294966976  ;;  %v27_v0 = vlaneseq  ;;  %v21_v10 = vld [vmem:[#allocation2] sm:$0xff]  ;;  %v560_v11 = vld [vmem:[#allocation2 + $0x8] sm:$0xff]  ;;  %s517_s0 = smov [#allocation5]  }
  0x13   :  { %v584_v20 = vld [vmem:[#allocation2 + $0x10] sm:$0xf]  ;;  %s586_s18 = sshll.u32 %s517_s0, 4  ;;  %s785_s18 = int_to_ptr.vmem [resolvable:$true] %s586_s18 }
  0x14   :  { %v542_v1 = vshrl.u32 %v27_v0, 7  ;;  %s490_s19 = scalar_lea.vmem %s785_s18, 40960  ;;  %p495_p9 = scmp.lt.s32.totalorder %s785_s18, %s785_s18 }
  0x15   :  { %p491_p8 = scmp.ne.s32.totalorder %s785_s18, %s490_s19  ;;  %p496_p10 = scmp.lt.s32.totalorder %s490_s19, %s490_s19 }
  0x16   :  { %v545_v2 = vsub.s32 0, %v542_v1  ;;  %v548_v3 = vsub.s32 1, %v542_v1  ;;  %v551_v4 = vsub.s32 2, %v542_v1  ;;  %v554_v5 = vsub.s32 3, %v542_v1 }
  0x17   :  { %v45_v6 = vsub.s32 4, %v542_v1  ;;  %v49_v7 = vsub.s32 5, %v542_v1  ;;  %v53_v8 = vsub.s32 6, %v542_v1  ;;  %v57_v9 = vsub.s32 7, %v542_v1  ;;  %p497_p11 = por %p496_p10, %p495_p9 }
  0x18   :  { %v30_v12 = vrot.slane %v21_v10, %v545_v2  ;;  %v34_v13 = vrot.slane %v21_v10, %v548_v3  ;;  %v38_v14 = vrot.slane %v21_v10, %v551_v4  ;;  %v566_v15 = vrot.slane %v21_v10, %v554_v5 }
  0x19   :  { %v570_v16 = vrot.slane %v21_v10, %v45_v6  ;;  %v574_v17 = vrot.slane %v21_v10, %v49_v7  ;;  %v578_v18 = vrot.slane %v21_v10, %v53_v8  ;;  %v582_v19 = vrot.slane %v21_v10, %v57_v9  ;;  %p498_p12 = pnand %p497_p11, %p491_p8 }
  0x1a   :  { %127 = vst [vmem:[#allocation5] sm:$0xff] %v30_v12  ;;  %147 = vst [vmem:[#allocation5 + $0xa0] sm:$0xff] %v30_v12  ;;  %v606_v21 = vrot.slane %v560_v11, %v545_v2  ;;  %v610_v22 = vrot.slane %v560_v11, %v548_v3  ;;  %v614_v23 = vrot.slane %v560_v11, %v551_v4 }
  0x1b   :  { %167 = vst [vmem:[#allocation5 + $0x140] sm:$0xff] %v30_v12  ;;  %187 = vst [vmem:[#allocation5 + $0x1e0] sm:$0xff] %v30_v12  ;;  %v618_v24 = vrot.slane %v560_v11, %v554_v5  ;;  %v687_v25 = vrot.slane %v560_v11, %v45_v6  ;;  %v692_v26 = vrot.slane %v560_v11, %v49_v7 }
  0x1c   :  { %207 = vst [vmem:[#allocation5 + $0x280] sm:$0xff] %v30_v12  ;;  %227 = vst [vmem:[#allocation5 + $0x320] sm:$0xff] %v30_v12  ;;  %v697_v27 = vrot.slane %v560_v11, %v53_v8  ;;  %v702_v28 = vrot.slane %v560_v11, %v57_v9  ;;  %v770_v29 = vrot.slane %v584_v20, %v545_v2 }
  0x1d   :  { %247 = vst [vmem:[#allocation5 + $0x3c0] sm:$0xff] %v30_v12  ;;  %267 = vst [vmem:[#allocation5 + $0x460] sm:$0xff] %v30_v12  ;;  %v774_v30 = vrot.slane %v584_v20, %v548_v3  ;;  %v778_v31 = vrot.slane %v584_v20, %v551_v4  ;;  %v782_v32 = vrot.slane %v584_v20, %v554_v5 }
  0x1e   :  { %287 = vst [vmem:[#allocation5 + $0x500] sm:$0xff] %v30_v12  ;;  %307 = vst [vmem:[#allocation5 + $0x5a0] sm:$0xff] %v30_v12 }
  0x1f   :  { %327 = vst [vmem:[#allocation5 + $0x640] sm:$0xff] %v30_v12  ;;  %347 = vst [vmem:[#allocation5 + $0x6e0] sm:$0xff] %v30_v12 }
  0x20   :  { %367 = vst [vmem:[#allocation5 + $0x780] sm:$0xff] %v30_v12  ;;  %387 = vst [vmem:[#allocation5 + $0x820] sm:$0xff] %v30_v12 }
  0x21   :  { %407 = vst [vmem:[#allocation5 + $0x8c0] sm:$0xff] %v30_v12  ;;  %427 = vst [vmem:[#allocation5 + $0x960] sm:$0xff] %v30_v12 }
  0x22   :  { %128 = vst [vmem:[#allocation5 + $0x8] sm:$0xff] %v34_v13  ;;  %148 = vst [vmem:[#allocation5 + $0xa8] sm:$0xff] %v34_v13 }
  0x23   :  { %168 = vst [vmem:[#allocation5 + $0x148] sm:$0xff] %v34_v13  ;;  %188 = vst [vmem:[#allocation5 + $0x1e8] sm:$0xff] %v34_v13 }
  0x24   :  { %208 = vst [vmem:[#allocation5 + $0x288] sm:$0xff] %v34_v13  ;;  %228 = vst [vmem:[#allocation5 + $0x328] sm:$0xff] %v34_v13 }
  0x25   :  { %248 = vst [vmem:[#allocation5 + $0x3c8] sm:$0xff] %v34_v13  ;;  %268 = vst [vmem:[#allocation5 + $0x468] sm:$0xff] %v34_v13 }
  0x26   :  { %288 = vst [vmem:[#allocation5 + $0x508] sm:$0xff] %v34_v13  ;;  %308 = vst [vmem:[#allocation5 + $0x5a8] sm:$0xff] %v34_v13 }
  0x27   :  { %328 = vst [vmem:[#allocation5 + $0x648] sm:$0xff] %v34_v13  ;;  %348 = vst [vmem:[#allocation5 + $0x6e8] sm:$0xff] %v34_v13 }
  0x28   :  { %368 = vst [vmem:[#allocation5 + $0x788] sm:$0xff] %v34_v13  ;;  %388 = vst [vmem:[#allocation5 + $0x828] sm:$0xff] %v34_v13 }
  0x29   :  { %408 = vst [vmem:[#allocation5 + $0x8c8] sm:$0xff] %v34_v13  ;;  %428 = vst [vmem:[#allocation5 + $0x968] sm:$0xff] %v34_v13 }
  0x2a   :  { %129 = vst [vmem:[#allocation5 + $0x10] sm:$0xff] %v38_v14  ;;  %149 = vst [vmem:[#allocation5 + $0xb0] sm:$0xff] %v38_v14 }
  0x2b   :  { %169 = vst [vmem:[#allocation5 + $0x150] sm:$0xff] %v38_v14  ;;  %189 = vst [vmem:[#allocation5 + $0x1f0] sm:$0xff] %v38_v14 }
  0x2c   :  { %209 = vst [vmem:[#allocation5 + $0x290] sm:$0xff] %v38_v14  ;;  %229 = vst [vmem:[#allocation5 + $0x330] sm:$0xff] %v38_v14 }
  0x2d   :  { %249 = vst [vmem:[#allocation5 + $0x3d0] sm:$0xff] %v38_v14  ;;  %269 = vst [vmem:[#allocation5 + $0x470] sm:$0xff] %v38_v14 }
  0x2e   :  { %289 = vst [vmem:[#allocation5 + $0x510] sm:$0xff] %v38_v14  ;;  %309 = vst [vmem:[#allocation5 + $0x5b0] sm:$0xff] %v38_v14 }
  0x2f   :  { %329 = vst [vmem:[#allocation5 + $0x650] sm:$0xff] %v38_v14  ;;  %349 = vst [vmem:[#allocation5 + $0x6f0] sm:$0xff] %v38_v14 }
  0x30   :  { %369 = vst [vmem:[#allocation5 + $0x790] sm:$0xff] %v38_v14  ;;  %389 = vst [vmem:[#allocation5 + $0x830] sm:$0xff] %v38_v14 }
  0x31   :  { %409 = vst [vmem:[#allocation5 + $0x8d0] sm:$0xff] %v38_v14  ;;  %429 = vst [vmem:[#allocation5 + $0x970] sm:$0xff] %v38_v14 }
  0x32   :  { %130 = vst [vmem:[#allocation5 + $0x18] sm:$0xff] %v566_v15  ;;  %150 = vst [vmem:[#allocation5 + $0xb8] sm:$0xff] %v566_v15 }
  0x33   :  { %170 = vst [vmem:[#allocation5 + $0x158] sm:$0xff] %v566_v15  ;;  %190 = vst [vmem:[#allocation5 + $0x1f8] sm:$0xff] %v566_v15 }
  0x34   :  { %210 = vst [vmem:[#allocation5 + $0x298] sm:$0xff] %v566_v15  ;;  %230 = vst [vmem:[#allocation5 + $0x338] sm:$0xff] %v566_v15 }
  0x35   :  { %250 = vst [vmem:[#allocation5 + $0x3d8] sm:$0xff] %v566_v15  ;;  %270 = vst [vmem:[#allocation5 + $0x478] sm:$0xff] %v566_v15 }
  0x36   :  { %290 = vst [vmem:[#allocation5 + $0x518] sm:$0xff] %v566_v15  ;;  %310 = vst [vmem:[#allocation5 + $0x5b8] sm:$0xff] %v566_v15 }
  0x37   :  { %330 = vst [vmem:[#allocation5 + $0x658] sm:$0xff] %v566_v15  ;;  %350 = vst [vmem:[#allocation5 + $0x6f8] sm:$0xff] %v566_v15 }
  0x38   :  { %370 = vst [vmem:[#allocation5 + $0x798] sm:$0xff] %v566_v15  ;;  %390 = vst [vmem:[#allocation5 + $0x838] sm:$0xff] %v566_v15 }
  0x39   :  { %410 = vst [vmem:[#allocation5 + $0x8d8] sm:$0xff] %v566_v15  ;;  %430 = vst [vmem:[#allocation5 + $0x978] sm:$0xff] %v566_v15 }
  0x3a   :  { %131 = vst [vmem:[#allocation5 + $0x20] sm:$0xff] %v570_v16  ;;  %151 = vst [vmem:[#allocation5 + $0xc0] sm:$0xff] %v570_v16 }
  0x3b   :  { %171 = vst [vmem:[#allocation5 + $0x160] sm:$0xff] %v570_v16  ;;  %191 = vst [vmem:[#allocation5 + $0x200] sm:$0xff] %v570_v16 }
  0x3c   :  { %211 = vst [vmem:[#allocation5 + $0x2a0] sm:$0xff] %v570_v16  ;;  %231 = vst [vmem:[#allocation5 + $0x340] sm:$0xff] %v570_v16 }
  0x3d   :  { %251 = vst [vmem:[#allocation5 + $0x3e0] sm:$0xff] %v570_v16  ;;  %271 = vst [vmem:[#allocation5 + $0x480] sm:$0xff] %v570_v16 }
  0x3e   :  { %291 = vst [vmem:[#allocation5 + $0x520] sm:$0xff] %v570_v16  ;;  %311 = vst [vmem:[#allocation5 + $0x5c0] sm:$0xff] %v570_v16 }
  0x3f   :  { %331 = vst [vmem:[#allocation5 + $0x660] sm:$0xff] %v570_v16  ;;  %351 = vst [vmem:[#allocation5 + $0x700] sm:$0xff] %v570_v16 }
  0x40   :  { %371 = vst [vmem:[#allocation5 + $0x7a0] sm:$0xff] %v570_v16  ;;  %391 = vst [vmem:[#allocation5 + $0x840] sm:$0xff] %v570_v16 }
  0x41   :  { %411 = vst [vmem:[#allocation5 + $0x8e0] sm:$0xff] %v570_v16  ;;  %431 = vst [vmem:[#allocation5 + $0x980] sm:$0xff] %v570_v16 }
  0x42   :  { %132 = vst [vmem:[#allocation5 + $0x28] sm:$0xff] %v574_v17  ;;  %152 = vst [vmem:[#allocation5 + $0xc8] sm:$0xff] %v574_v17 }
  0x43   :  { %172 = vst [vmem:[#allocation5 + $0x168] sm:$0xff] %v574_v17  ;;  %192 = vst [vmem:[#allocation5 + $0x208] sm:$0xff] %v574_v17 }
  0x44   :  { %212 = vst [vmem:[#allocation5 + $0x2a8] sm:$0xff] %v574_v17  ;;  %232 = vst [vmem:[#allocation5 + $0x348] sm:$0xff] %v574_v17 }
  0x45   :  { %252 = vst [vmem:[#allocation5 + $0x3e8] sm:$0xff] %v574_v17  ;;  %272 = vst [vmem:[#allocation5 + $0x488] sm:$0xff] %v574_v17 }
  0x46   :  { %292 = vst [vmem:[#allocation5 + $0x528] sm:$0xff] %v574_v17  ;;  %312 = vst [vmem:[#allocation5 + $0x5c8] sm:$0xff] %v574_v17 }
  0x47   :  { %332 = vst [vmem:[#allocation5 + $0x668] sm:$0xff] %v574_v17  ;;  %352 = vst [vmem:[#allocation5 + $0x708] sm:$0xff] %v574_v17 }
  0x48   :  { %372 = vst [vmem:[#allocation5 + $0x7a8] sm:$0xff] %v574_v17  ;;  %392 = vst [vmem:[#allocation5 + $0x848] sm:$0xff] %v574_v17 }
  0x49   :  { %412 = vst [vmem:[#allocation5 + $0x8e8] sm:$0xff] %v574_v17  ;;  %432 = vst [vmem:[#allocation5 + $0x988] sm:$0xff] %v574_v17 }
  0x4a   :  { %133 = vst [vmem:[#allocation5 + $0x30] sm:$0xff] %v578_v18  ;;  %153 = vst [vmem:[#allocation5 + $0xd0] sm:$0xff] %v578_v18 }
  0x4b   :  { %173 = vst [vmem:[#allocation5 + $0x170] sm:$0xff] %v578_v18  ;;  %193 = vst [vmem:[#allocation5 + $0x210] sm:$0xff] %v578_v18 }
  0x4c   :  { %213 = vst [vmem:[#allocation5 + $0x2b0] sm:$0xff] %v578_v18  ;;  %233 = vst [vmem:[#allocation5 + $0x350] sm:$0xff] %v578_v18 }
  0x4d   :  { %253 = vst [vmem:[#allocation5 + $0x3f0] sm:$0xff] %v578_v18  ;;  %273 = vst [vmem:[#allocation5 + $0x490] sm:$0xff] %v578_v18 }
  0x4e   :  { %293 = vst [vmem:[#allocation5 + $0x530] sm:$0xff] %v578_v18  ;;  %313 = vst [vmem:[#allocation5 + $0x5d0] sm:$0xff] %v578_v18 }
  0x4f   :  { %333 = vst [vmem:[#allocation5 + $0x670] sm:$0xff] %v578_v18  ;;  %353 = vst [vmem:[#allocation5 + $0x710] sm:$0xff] %v578_v18 }
  0x50   :  { %373 = vst [vmem:[#allocation5 + $0x7b0] sm:$0xff] %v578_v18  ;;  %393 = vst [vmem:[#allocation5 + $0x850] sm:$0xff] %v578_v18 }
  0x51   :  { %413 = vst [vmem:[#allocation5 + $0x8f0] sm:$0xff] %v578_v18  ;;  %433 = vst [vmem:[#allocation5 + $0x990] sm:$0xff] %v578_v18 }
  0x52   :  { %134 = vst [vmem:[#allocation5 + $0x38] sm:$0xff] %v582_v19  ;;  %154 = vst [vmem:[#allocation5 + $0xd8] sm:$0xff] %v582_v19 }
  0x53   :  { %174 = vst [vmem:[#allocation5 + $0x178] sm:$0xff] %v582_v19  ;;  %194 = vst [vmem:[#allocation5 + $0x218] sm:$0xff] %v582_v19 }
  0x54   :  { %214 = vst [vmem:[#allocation5 + $0x2b8] sm:$0xff] %v582_v19  ;;  %234 = vst [vmem:[#allocation5 + $0x358] sm:$0xff] %v582_v19 }
  0x55   :  { %254 = vst [vmem:[#allocation5 + $0x3f8] sm:$0xff] %v582_v19  ;;  %274 = vst [vmem:[#allocation5 + $0x498] sm:$0xff] %v582_v19 }
  0x56   :  { %294 = vst [vmem:[#allocation5 + $0x538] sm:$0xff] %v582_v19  ;;  %314 = vst [vmem:[#allocation5 + $0x5d8] sm:$0xff] %v582_v19 }
  0x57   :  { %334 = vst [vmem:[#allocation5 + $0x678] sm:$0xff] %v582_v19  ;;  %354 = vst [vmem:[#allocation5 + $0x718] sm:$0xff] %v582_v19 }
  0x58   :  { %374 = vst [vmem:[#allocation5 + $0x7b8] sm:$0xff] %v582_v19  ;;  %394 = vst [vmem:[#allocation5 + $0x858] sm:$0xff] %v582_v19 }
  0x59   :  { %414 = vst [vmem:[#allocation5 + $0x8f8] sm:$0xff] %v582_v19  ;;  %434 = vst [vmem:[#allocation5 + $0x998] sm:$0xff] %v582_v19 }
  0x5a   :  { %135 = vst [vmem:[#allocation5 + $0x40] sm:$0xff] %v606_v21  ;;  %155 = vst [vmem:[#allocation5 + $0xe0] sm:$0xff] %v606_v21 }
  0x5b   :  { %175 = vst [vmem:[#allocation5 + $0x180] sm:$0xff] %v606_v21  ;;  %195 = vst [vmem:[#allocation5 + $0x220] sm:$0xff] %v606_v21 }
  0x5c   :  { %215 = vst [vmem:[#allocation5 + $0x2c0] sm:$0xff] %v606_v21  ;;  %235 = vst [vmem:[#allocation5 + $0x360] sm:$0xff] %v606_v21 }
  0x5d   :  { %255 = vst [vmem:[#allocation5 + $0x400] sm:$0xff] %v606_v21  ;;  %275 = vst [vmem:[#allocation5 + $0x4a0] sm:$0xff] %v606_v21 }
  0x5e   :  { %295 = vst [vmem:[#allocation5 + $0x540] sm:$0xff] %v606_v21  ;;  %315 = vst [vmem:[#allocation5 + $0x5e0] sm:$0xff] %v606_v21 }
  0x5f   :  { %335 = vst [vmem:[#allocation5 + $0x680] sm:$0xff] %v606_v21  ;;  %355 = vst [vmem:[#allocation5 + $0x720] sm:$0xff] %v606_v21 }
  0x60   :  { %375 = vst [vmem:[#allocation5 + $0x7c0] sm:$0xff] %v606_v21  ;;  %395 = vst [vmem:[#allocation5 + $0x860] sm:$0xff] %v606_v21 }
  0x61   :  { %415 = vst [vmem:[#allocation5 + $0x900] sm:$0xff] %v606_v21  ;;  %435 = vst [vmem:[#allocation5 + $0x9a0] sm:$0xff] %v606_v21 }
  0x62   :  { %136 = vst [vmem:[#allocation5 + $0x48] sm:$0xff] %v610_v22  ;;  %156 = vst [vmem:[#allocation5 + $0xe8] sm:$0xff] %v610_v22 }
  0x63   :  { %176 = vst [vmem:[#allocation5 + $0x188] sm:$0xff] %v610_v22  ;;  %196 = vst [vmem:[#allocation5 + $0x228] sm:$0xff] %v610_v22 }
  0x64   :  { %216 = vst [vmem:[#allocation5 + $0x2c8] sm:$0xff] %v610_v22  ;;  %236 = vst [vmem:[#allocation5 + $0x368] sm:$0xff] %v610_v22 }
  0x65   :  { %256 = vst [vmem:[#allocation5 + $0x408] sm:$0xff] %v610_v22  ;;  %276 = vst [vmem:[#allocation5 + $0x4a8] sm:$0xff] %v610_v22 }
  0x66   :  { %296 = vst [vmem:[#allocation5 + $0x548] sm:$0xff] %v610_v22  ;;  %316 = vst [vmem:[#allocation5 + $0x5e8] sm:$0xff] %v610_v22 }
  0x67   :  { %336 = vst [vmem:[#allocation5 + $0x688] sm:$0xff] %v610_v22  ;;  %356 = vst [vmem:[#allocation5 + $0x728] sm:$0xff] %v610_v22 }
  0x68   :  { %376 = vst [vmem:[#allocation5 + $0x7c8] sm:$0xff] %v610_v22  ;;  %396 = vst [vmem:[#allocation5 + $0x868] sm:$0xff] %v610_v22 }
  0x69   :  { %416 = vst [vmem:[#allocation5 + $0x908] sm:$0xff] %v610_v22  ;;  %436 = vst [vmem:[#allocation5 + $0x9a8] sm:$0xff] %v610_v22 }
  0x6a   :  { %137 = vst [vmem:[#allocation5 + $0x50] sm:$0xff] %v614_v23  ;;  %157 = vst [vmem:[#allocation5 + $0xf0] sm:$0xff] %v614_v23 }
  0x6b   :  { %177 = vst [vmem:[#allocation5 + $0x190] sm:$0xff] %v614_v23  ;;  %197 = vst [vmem:[#allocation5 + $0x230] sm:$0xff] %v614_v23 }
  0x6c   :  { %217 = vst [vmem:[#allocation5 + $0x2d0] sm:$0xff] %v614_v23  ;;  %237 = vst [vmem:[#allocation5 + $0x370] sm:$0xff] %v614_v23 }
  0x6d   :  { %257 = vst [vmem:[#allocation5 + $0x410] sm:$0xff] %v614_v23  ;;  %277 = vst [vmem:[#allocation5 + $0x4b0] sm:$0xff] %v614_v23 }
  0x6e   :  { %297 = vst [vmem:[#allocation5 + $0x550] sm:$0xff] %v614_v23  ;;  %317 = vst [vmem:[#allocation5 + $0x5f0] sm:$0xff] %v614_v23 }
  0x6f   :  { %337 = vst [vmem:[#allocation5 + $0x690] sm:$0xff] %v614_v23  ;;  %357 = vst [vmem:[#allocation5 + $0x730] sm:$0xff] %v614_v23 }
  0x70   :  { %377 = vst [vmem:[#allocation5 + $0x7d0] sm:$0xff] %v614_v23  ;;  %397 = vst [vmem:[#allocation5 + $0x870] sm:$0xff] %v614_v23 }
  0x71   :  { %417 = vst [vmem:[#allocation5 + $0x910] sm:$0xff] %v614_v23  ;;  %437 = vst [vmem:[#allocation5 + $0x9b0] sm:$0xff] %v614_v23 }
  0x72   :  { %138 = vst [vmem:[#allocation5 + $0x58] sm:$0xff] %v618_v24  ;;  %158 = vst [vmem:[#allocation5 + $0xf8] sm:$0xff] %v618_v24 }
  0x73   :  { %178 = vst [vmem:[#allocation5 + $0x198] sm:$0xff] %v618_v24  ;;  %198 = vst [vmem:[#allocation5 + $0x238] sm:$0xff] %v618_v24 }
  0x74   :  { %218 = vst [vmem:[#allocation5 + $0x2d8] sm:$0xff] %v618_v24  ;;  %238 = vst [vmem:[#allocation5 + $0x378] sm:$0xff] %v618_v24 }
  0x75   :  { %258 = vst [vmem:[#allocation5 + $0x418] sm:$0xff] %v618_v24  ;;  %278 = vst [vmem:[#allocation5 + $0x4b8] sm:$0xff] %v618_v24 }
  0x76   :  { %298 = vst [vmem:[#allocation5 + $0x558] sm:$0xff] %v618_v24  ;;  %318 = vst [vmem:[#allocation5 + $0x5f8] sm:$0xff] %v618_v24 }
  0x77   :  { %338 = vst [vmem:[#allocation5 + $0x698] sm:$0xff] %v618_v24  ;;  %358 = vst [vmem:[#allocation5 + $0x738] sm:$0xff] %v618_v24 }
  0x78   :  { %378 = vst [vmem:[#allocation5 + $0x7d8] sm:$0xff] %v618_v24  ;;  %398 = vst [vmem:[#allocation5 + $0x878] sm:$0xff] %v618_v24 }
  0x79   :  { %418 = vst [vmem:[#allocation5 + $0x918] sm:$0xff] %v618_v24  ;;  %438 = vst [vmem:[#allocation5 + $0x9b8] sm:$0xff] %v618_v24 }
  0x7a   :  { %139 = vst [vmem:[#allocation5 + $0x60] sm:$0xff] %v687_v25  ;;  %159 = vst [vmem:[#allocation5 + $0x100] sm:$0xff] %v687_v25 }
  0x7b   :  { %179 = vst [vmem:[#allocation5 + $0x1a0] sm:$0xff] %v687_v25  ;;  %199 = vst [vmem:[#allocation5 + $0x240] sm:$0xff] %v687_v25 }
  0x7c   :  { %219 = vst [vmem:[#allocation5 + $0x2e0] sm:$0xff] %v687_v25  ;;  %239 = vst [vmem:[#allocation5 + $0x380] sm:$0xff] %v687_v25 }
  0x7d   :  { %259 = vst [vmem:[#allocation5 + $0x420] sm:$0xff] %v687_v25  ;;  %279 = vst [vmem:[#allocation5 + $0x4c0] sm:$0xff] %v687_v25 }
  0x7e   :  { %299 = vst [vmem:[#allocation5 + $0x560] sm:$0xff] %v687_v25  ;;  %319 = vst [vmem:[#allocation5 + $0x600] sm:$0xff] %v687_v25 }
  0x7f   :  { %339 = vst [vmem:[#allocation5 + $0x6a0] sm:$0xff] %v687_v25  ;;  %359 = vst [vmem:[#allocation5 + $0x740] sm:$0xff] %v687_v25 }
  0x80   :  { %379 = vst [vmem:[#allocation5 + $0x7e0] sm:$0xff] %v687_v25  ;;  %399 = vst [vmem:[#allocation5 + $0x880] sm:$0xff] %v687_v25 }
  0x81   :  { %419 = vst [vmem:[#allocation5 + $0x920] sm:$0xff] %v687_v25  ;;  %439 = vst [vmem:[#allocation5 + $0x9c0] sm:$0xff] %v687_v25 }
  0x82   :  { %140 = vst [vmem:[#allocation5 + $0x68] sm:$0xff] %v692_v26  ;;  %160 = vst [vmem:[#allocation5 + $0x108] sm:$0xff] %v692_v26 }
  0x83   :  { %180 = vst [vmem:[#allocation5 + $0x1a8] sm:$0xff] %v692_v26  ;;  %200 = vst [vmem:[#allocation5 + $0x248] sm:$0xff] %v692_v26 }
  0x84   :  { %220 = vst [vmem:[#allocation5 + $0x2e8] sm:$0xff] %v692_v26  ;;  %240 = vst [vmem:[#allocation5 + $0x388] sm:$0xff] %v692_v26 }
  0x85   :  { %260 = vst [vmem:[#allocation5 + $0x428] sm:$0xff] %v692_v26  ;;  %280 = vst [vmem:[#allocation5 + $0x4c8] sm:$0xff] %v692_v26 }
  0x86   :  { %300 = vst [vmem:[#allocation5 + $0x568] sm:$0xff] %v692_v26  ;;  %320 = vst [vmem:[#allocation5 + $0x608] sm:$0xff] %v692_v26 }
  0x87   :  { %340 = vst [vmem:[#allocation5 + $0x6a8] sm:$0xff] %v692_v26  ;;  %360 = vst [vmem:[#allocation5 + $0x748] sm:$0xff] %v692_v26 }
  0x88   :  { %380 = vst [vmem:[#allocation5 + $0x7e8] sm:$0xff] %v692_v26  ;;  %400 = vst [vmem:[#allocation5 + $0x888] sm:$0xff] %v692_v26 }
  0x89   :  { %420 = vst [vmem:[#allocation5 + $0x928] sm:$0xff] %v692_v26  ;;  %440 = vst [vmem:[#allocation5 + $0x9c8] sm:$0xff] %v692_v26 }
  0x8a   :  { %141 = vst [vmem:[#allocation5 + $0x70] sm:$0xff] %v697_v27  ;;  %161 = vst [vmem:[#allocation5 + $0x110] sm:$0xff] %v697_v27 }
  0x8b   :  { %181 = vst [vmem:[#allocation5 + $0x1b0] sm:$0xff] %v697_v27  ;;  %201 = vst [vmem:[#allocation5 + $0x250] sm:$0xff] %v697_v27 }
  0x8c   :  { %221 = vst [vmem:[#allocation5 + $0x2f0] sm:$0xff] %v697_v27  ;;  %241 = vst [vmem:[#allocation5 + $0x390] sm:$0xff] %v697_v27 }
  0x8d   :  { %261 = vst [vmem:[#allocation5 + $0x430] sm:$0xff] %v697_v27  ;;  %281 = vst [vmem:[#allocation5 + $0x4d0] sm:$0xff] %v697_v27 }
  0x8e   :  { %301 = vst [vmem:[#allocation5 + $0x570] sm:$0xff] %v697_v27  ;;  %321 = vst [vmem:[#allocation5 + $0x610] sm:$0xff] %v697_v27 }
  0x8f   :  { %341 = vst [vmem:[#allocation5 + $0x6b0] sm:$0xff] %v697_v27  ;;  %361 = vst [vmem:[#allocation5 + $0x750] sm:$0xff] %v697_v27 }
  0x90   :  { %381 = vst [vmem:[#allocation5 + $0x7f0] sm:$0xff] %v697_v27  ;;  %401 = vst [vmem:[#allocation5 + $0x890] sm:$0xff] %v697_v27 }
  0x91   :  { %421 = vst [vmem:[#allocation5 + $0x930] sm:$0xff] %v697_v27  ;;  %441 = vst [vmem:[#allocation5 + $0x9d0] sm:$0xff] %v697_v27 }
  0x92   :  { %142 = vst [vmem:[#allocation5 + $0x78] sm:$0xff] %v702_v28  ;;  %162 = vst [vmem:[#allocation5 + $0x118] sm:$0xff] %v702_v28 }
  0x93   :  { %182 = vst [vmem:[#allocation5 + $0x1b8] sm:$0xff] %v702_v28  ;;  %202 = vst [vmem:[#allocation5 + $0x258] sm:$0xff] %v702_v28 }
  0x94   :  { %222 = vst [vmem:[#allocation5 + $0x2f8] sm:$0xff] %v702_v28  ;;  %242 = vst [vmem:[#allocation5 + $0x398] sm:$0xff] %v702_v28 }
  0x95   :  { %262 = vst [vmem:[#allocation5 + $0x438] sm:$0xff] %v702_v28  ;;  %282 = vst [vmem:[#allocation5 + $0x4d8] sm:$0xff] %v702_v28 }
  0x96   :  { %302 = vst [vmem:[#allocation5 + $0x578] sm:$0xff] %v702_v28  ;;  %322 = vst [vmem:[#allocation5 + $0x618] sm:$0xff] %v702_v28 }
  0x97   :  { %342 = vst [vmem:[#allocation5 + $0x6b8] sm:$0xff] %v702_v28  ;;  %362 = vst [vmem:[#allocation5 + $0x758] sm:$0xff] %v702_v28 }
  0x98   :  { %382 = vst [vmem:[#allocation5 + $0x7f8] sm:$0xff] %v702_v28  ;;  %402 = vst [vmem:[#allocation5 + $0x898] sm:$0xff] %v702_v28 }
  0x99   :  { %422 = vst [vmem:[#allocation5 + $0x938] sm:$0xff] %v702_v28  ;;  %442 = vst [vmem:[#allocation5 + $0x9d8] sm:$0xff] %v702_v28 }
  0x9a   :  { %143 = vst [vmem:[#allocation5 + $0x80] sm:$0xff] %v770_v29  ;;  %163 = vst [vmem:[#allocation5 + $0x120] sm:$0xff] %v770_v29 }
  0x9b   :  { %183 = vst [vmem:[#allocation5 + $0x1c0] sm:$0xff] %v770_v29  ;;  %203 = vst [vmem:[#allocation5 + $0x260] sm:$0xff] %v770_v29 }
  0x9c   :  { %223 = vst [vmem:[#allocation5 + $0x300] sm:$0xff] %v770_v29  ;;  %243 = vst [vmem:[#allocation5 + $0x3a0] sm:$0xff] %v770_v29 }
  0x9d   :  { %263 = vst [vmem:[#allocation5 + $0x440] sm:$0xff] %v770_v29  ;;  %283 = vst [vmem:[#allocation5 + $0x4e0] sm:$0xff] %v770_v29 }
  0x9e   :  { %303 = vst [vmem:[#allocation5 + $0x580] sm:$0xff] %v770_v29  ;;  %323 = vst [vmem:[#allocation5 + $0x620] sm:$0xff] %v770_v29 }
  0x9f   :  { %343 = vst [vmem:[#allocation5 + $0x6c0] sm:$0xff] %v770_v29  ;;  %363 = vst [vmem:[#allocation5 + $0x760] sm:$0xff] %v770_v29 }
  0xa0   :  { %383 = vst [vmem:[#allocation5 + $0x800] sm:$0xff] %v770_v29  ;;  %403 = vst [vmem:[#allocation5 + $0x8a0] sm:$0xff] %v770_v29 }
  0xa1   :  { %423 = vst [vmem:[#allocation5 + $0x940] sm:$0xff] %v770_v29  ;;  %443 = vst [vmem:[#allocation5 + $0x9e0] sm:$0xff] %v770_v29 }
  0xa2   :  { %144 = vst [vmem:[#allocation5 + $0x88] sm:$0xff] %v774_v30  ;;  %164 = vst [vmem:[#allocation5 + $0x128] sm:$0xff] %v774_v30 }
  0xa3   :  { %184 = vst [vmem:[#allocation5 + $0x1c8] sm:$0xff] %v774_v30  ;;  %204 = vst [vmem:[#allocation5 + $0x268] sm:$0xff] %v774_v30 }
  0xa4   :  { %224 = vst [vmem:[#allocation5 + $0x308] sm:$0xff] %v774_v30  ;;  %244 = vst [vmem:[#allocation5 + $0x3a8] sm:$0xff] %v774_v30 }
  0xa5   :  { %264 = vst [vmem:[#allocation5 + $0x448] sm:$0xff] %v774_v30  ;;  %284 = vst [vmem:[#allocation5 + $0x4e8] sm:$0xff] %v774_v30 }
  0xa6   :  { %304 = vst [vmem:[#allocation5 + $0x588] sm:$0xff] %v774_v30  ;;  %324 = vst [vmem:[#allocation5 + $0x628] sm:$0xff] %v774_v30 }
  0xa7   :  { %344 = vst [vmem:[#allocation5 + $0x6c8] sm:$0xff] %v774_v30  ;;  %364 = vst [vmem:[#allocation5 + $0x768] sm:$0xff] %v774_v30 }
  0xa8   :  { %384 = vst [vmem:[#allocation5 + $0x808] sm:$0xff] %v774_v30  ;;  %404 = vst [vmem:[#allocation5 + $0x8a8] sm:$0xff] %v774_v30 }
  0xa9   :  { %424 = vst [vmem:[#allocation5 + $0x948] sm:$0xff] %v774_v30  ;;  %444 = vst [vmem:[#allocation5 + $0x9e8] sm:$0xff] %v774_v30 }
  0xaa   :  { %145 = vst [vmem:[#allocation5 + $0x90] sm:$0xff] %v778_v31  ;;  %165 = vst [vmem:[#allocation5 + $0x130] sm:$0xff] %v778_v31 }
  0xab   :  { %185 = vst [vmem:[#allocation5 + $0x1d0] sm:$0xff] %v778_v31  ;;  %205 = vst [vmem:[#allocation5 + $0x270] sm:$0xff] %v778_v31 }
  0xac   :  { %225 = vst [vmem:[#allocation5 + $0x310] sm:$0xff] %v778_v31  ;;  %245 = vst [vmem:[#allocation5 + $0x3b0] sm:$0xff] %v778_v31 }
  0xad   :  { %265 = vst [vmem:[#allocation5 + $0x450] sm:$0xff] %v778_v31  ;;  %285 = vst [vmem:[#allocation5 + $0x4f0] sm:$0xff] %v778_v31 }
  0xae   :  { %305 = vst [vmem:[#allocation5 + $0x590] sm:$0xff] %v778_v31  ;;  %325 = vst [vmem:[#allocation5 + $0x630] sm:$0xff] %v778_v31 }
  0xaf   :  { %345 = vst [vmem:[#allocation5 + $0x6d0] sm:$0xff] %v778_v31  ;;  %365 = vst [vmem:[#allocation5 + $0x770] sm:$0xff] %v778_v31 }
  0xb0   :  { %385 = vst [vmem:[#allocation5 + $0x810] sm:$0xff] %v778_v31  ;;  %405 = vst [vmem:[#allocation5 + $0x8b0] sm:$0xff] %v778_v31 }
  0xb1   :  { %425 = vst [vmem:[#allocation5 + $0x950] sm:$0xff] %v778_v31  ;;  %445 = vst [vmem:[#allocation5 + $0x9f0] sm:$0xff] %v778_v31 }
  0xb2   :  { %146 = vst [vmem:[#allocation5 + $0x98] sm:$0xff] %v782_v32  ;;  %166 = vst [vmem:[#allocation5 + $0x138] sm:$0xff] %v782_v32 }
  0xb3   :  { %186 = vst [vmem:[#allocation5 + $0x1d8] sm:$0xff] %v782_v32  ;;  %206 = vst [vmem:[#allocation5 + $0x278] sm:$0xff] %v782_v32 }
  0xb4   :  { %226 = vst [vmem:[#allocation5 + $0x318] sm:$0xff] %v782_v32  ;;  %246 = vst [vmem:[#allocation5 + $0x3b8] sm:$0xff] %v782_v32 }
  0xb5   :  { %266 = vst [vmem:[#allocation5 + $0x458] sm:$0xff] %v782_v32  ;;  %286 = vst [vmem:[#allocation5 + $0x4f8] sm:$0xff] %v782_v32 }
  0xb6   :  { %306 = vst [vmem:[#allocation5 + $0x598] sm:$0xff] %v782_v32  ;;  %326 = vst [vmem:[#allocation5 + $0x638] sm:$0xff] %v782_v32 }
  0xb7   :  { %346 = vst [vmem:[#allocation5 + $0x6d8] sm:$0xff] %v782_v32  ;;  %366 = vst [vmem:[#allocation5 + $0x778] sm:$0xff] %v782_v32 }
  0xb8   :  { %386 = vst [vmem:[#allocation5 + $0x818] sm:$0xff] %v782_v32  ;;  %406 = vst [vmem:[#allocation5 + $0x8b8] sm:$0xff] %v782_v32 }
  0xb9   :  { %426 = vst [vmem:[#allocation5 + $0x958] sm:$0xff] %v782_v32  ;;  %446 = vst [vmem:[#allocation5 + $0x9f8] sm:$0xff] %v782_v32 }
  0xba   :  { %501 = shalt.err (!%p498_p12)
}
  0xbb   :  { %s502_s22 = scalar_lea.hbm %s933_s1, 40960 }
  0xbc   :  { %p503_p13 = scmp.ne.s32.totalorder %s933_s1, %s502_s22  ;;  %p506_p0 = scmp.lt.u32.totalorder %s502_s22, %s933_s1 }
  0xbe   :  { %p508_p1 = pnand %p506_p0, %p503_p13 }
  0xc0   :  { %511 = shalt.err (!%p508_p1)
}
  0xc1   :  { %s518_s27 = smov 2560   ;;  %s519_s28 = smov 160  }
  0xc2   :  { %458 = dma.vmem_to_hbm [thread:$0]  %s785_s18, 40960, %s933_s1, [#allocation4], %s518_s27, %s518_s27, %s519_s28  }
  0xc3   :  { %514 = dma.done.wait [#allocation4], 40960  }
  0xc4   :  { %515 = vsyncadd [#allocation4], 4294926336 }
  0xc5   :  { %462 = vsyncpa [#allocation3], 1 }
  0xc6   :  { %463 = vsyncpa [#allocation4], 1 }

</bundles_post_ra>
